<compile_context>
chip_gen: v5e
topology: v5e:2x2
jax: 0.10.0
libtpu: 0.0.40
codegen_flags: <defaults>
</compile_context>

<pallas_src>
import jax
import jax.numpy as jnp
from jax.experimental import pallas as pl
from jax.experimental.pallas import tpu as pltpu


def _round_up(n, m):
    return ((n + m - 1) // m) * m


def _default_epilogue_dtype():
    """bf16 bias/tanh epilogue on chips with bf16 VPU/EUP (v6e, v7x);
    f32 on v5e (no bf16 VPU/EUP) and anything unrecognized."""
    try:
        kind = jax.devices()[0].device_kind.lower()
    except Exception:
        return jnp.float32
    if ("v6" in kind) or ("v7" in kind) or ("7x" in kind):
        return jnp.bfloat16
    return jnp.float32


def _make_mlp_kernel(ep_dtype):
    def kernel(x_ref, w1_ref, b1_ref, w2_ref, b2_ref, w3t_ref, b3_ref, o_ref):
        # Layer 1: x cast to bf16 only at the MXU operand (no wrapper pass),
        # f32 accumulate, f32 bias add, tanh in ep_dtype (f32 v5e, bf16 v6e/v7x).
        a1 = jnp.dot(x_ref[...].astype(jnp.bfloat16), w1_ref[...],
                     preferred_element_type=jnp.float32) + b1_ref[...]
        h1 = jnp.tanh(a1.astype(ep_dtype))
        # Layer 2: h1 is already bf16 when ep_dtype is bf16 (astype is a no-op).
        a2 = jnp.dot(h1.astype(jnp.bfloat16), w2_ref[...],
                     preferred_element_type=jnp.float32) + b2_ref[...]
        h2 = jnp.tanh(a2.astype(ep_dtype))
        # Layer 3 (out_features == 1): VPU multiply against the broadcast w3
        # row + f32 lane reduction (avoids a wasted 1-column MXU pass).
        h3 = jnp.tanh(
            jnp.sum(h2.astype(jnp.float32) * w3t_ref[...], axis=-1,
                    keepdims=True)
            + b3_ref[...])
        o_ref[...] = h3.astype(o_ref.dtype)
    return kernel


def init_params(key, input_dim, hidden_dim=64, dtype=jnp.float32):
    """PyTorch-default Linear init (uniform(-1/sqrt(fan_in), 1/sqrt(fan_in))).
    Weights stored as (in, out), biases as (1, out)."""
    def linear(key, fan_in, fan_out):
        kw, kb = jax.random.split(key)
        bound = 1.0 / jnp.sqrt(jnp.asarray(fan_in, dtype=jnp.float32))
        w = jax.random.uniform(kw, (fan_in, fan_out), dtype, -bound, bound)
        b = jax.random.uniform(kb, (1, fan_out), dtype, -bound, bound)
        return w, b

    k1, k2, k3 = jax.random.split(key, 3)
    w1, b1 = linear(k1, input_dim, hidden_dim)
    w2, b2 = linear(k2, hidden_dim, hidden_dim)
    w3, b3 = linear(k3, hidden_dim, 1)
    return {"w1": w1, "b1": b1, "w2": w2, "b2": b2, "w3": w3, "b3": b3}


def pack_params(params):
    """Kernel-layout params: hidden dim zero-padded to a multiple of 128 lanes,
    matmul weights bf16, biases f32, final weight transposed to a (1, Hp) row.
    Zero padding is exact: padded b1/b2 lanes give tanh(0)=0 activations which
    hit all-zero padded rows of w2 / w3."""
    w1, b1 = params["w1"], params["b1"]
    w2, b2 = params["w2"], params["b2"]
    w3, b3 = params["w3"], params["b3"]
    H = w1.shape[1]
    Hp = _round_up(H, 128)
    p = Hp - H
    return {
        "w1": jnp.pad(w1, ((0, 0), (0, p))).astype(jnp.bfloat16),   # (in, Hp)
        "b1": jnp.pad(b1, ((0, 0), (0, p))).astype(jnp.float32),    # (1, Hp)
        "w2": jnp.pad(w2, ((0, p), (0, p))).astype(jnp.bfloat16),   # (Hp, Hp)
        "b2": jnp.pad(b2, ((0, 0), (0, p))).astype(jnp.float32),    # (1, Hp)
        "w3t": jnp.pad(w3.T, ((0, 0), (0, p))).astype(jnp.float32), # (1, Hp)
        "b3": b3.astype(jnp.float32),                               # (1, 1)
    }


def custom_policy_forward(x, packed, *, batch_tile=4096, epilogue_dtype=None):
    """x: (B, input_dim), any float dtype. packed: pack_params output.
    Returns (B, 1) in x.dtype."""
    B, in_dim = x.shape
    w1, b1 = packed["w1"], packed["b1"]
    w2, b2 = packed["w2"], packed["b2"]
    w3t, b3 = packed["w3t"], packed["b3"]
    Hp = w1.shape[1]
    if epilogue_dtype is None:
        epilogue_dtype = _default_epilogue_dtype()

    # Batch tile:
    #  * multiple of 8 (sublane rule); capped at 8192 so the (TB, Hp)
    #    intermediates plus double-buffered x/out tiles stay well inside the
    #    32 MiB default scoped VMEM limit (and v7x's 64 MiB physical VMEM).
    #  * >= 2 grid tiles whenever B allows, so ("parallel",) shards across
    #    v7x's two TensorCores (no-op on single-TC v5e/v6e).
    #  * B is NOT padded: the ragged last tile reads unspecified rows which
    #    only affect their own out-of-bounds (dropped) output rows.
    TB = min(int(batch_tile), 8192, _round_up(B, 8))
    TB = _round_up(max(TB, 8), 8)
    if B > 8:
        TB = min(TB, _round_up(pl.cdiv(B, 2), 8))
    grid = (pl.cdiv(B, TB),)

    const2d = lambda shape: pl.BlockSpec(shape, lambda i: (0, 0))

    nbytes = lambda a: a.size * a.dtype.itemsize
    cost = pl.CostEstimate(
        flops=2 * B * (in_dim * Hp + Hp * Hp + Hp),
        transcendentals=B * (2 * Hp + 1),
        bytes_accessed=(nbytes(x) + B * jnp.dtype(x.dtype).itemsize
                        + sum(nbytes(a) for a in (w1, b1, w2, b2, w3t, b3))),
    )

    return pl.pallas_call(
        _make_mlp_kernel(epilogue_dtype),
        out_shape=jax.ShapeDtypeStruct((B, 1), x.dtype),
        grid_spec=pltpu.PrefetchScalarGridSpec(
            num_scalar_prefetch=0,
            grid=grid,
            in_specs=[
                pl.BlockSpec((TB, in_dim), lambda i: (i, 0)),  # x: streamed
                const2d(w1.shape), const2d(b1.shape),          # weights resident
                const2d(w2.shape), const2d(b2.shape),
                const2d(w3t.shape), const2d(b3.shape),
            ],
            out_specs=pl.BlockSpec((TB, 1), lambda i: (i, 0)),
        ),
        compiler_params=pltpu.CompilerParams(
            dimension_semantics=("parallel",),  # 2x on v7x dual TensorCores
        ),
        cost_estimate=cost,
    )(x, w1, b1, w2, b2, w3t, b3)


if __name__ == "__main__":
    key = jax.random.PRNGKey(0)
    k_x, k_p = jax.random.split(key)

    batch = 200          # exercises >=2 grid tiles + ragged (non-divisible) last tile
    input_dim = 16
    hidden_dim = 64

    x = jax.random.normal(k_x, (batch, input_dim), dtype=jnp.float32)
    params = init_params(k_p, input_dim, hidden_dim)
    packed = pack_params(params)

    ep = _default_epilogue_dtype()
    out = custom_policy_forward(x, packed)
    out = jax.block_until_ready(out)
    assert out.shape == (batch, 1)
    assert out.dtype == x.dtype

    # (a) Matched-numerics reference: bf16 MXU operands, f32 accumulate,
    #     same epilogue dtype as the kernel.
    xb = x.astype(jnp.bfloat16)
    w1b = params["w1"].astype(jnp.bfloat16)
    w2b = params["w2"].astype(jnp.bfloat16)
    h1 = jnp.tanh((jnp.dot(xb, w1b, preferred_element_type=jnp.float32)
                   + params["b1"]).astype(ep))
    h2 = jnp.tanh((jnp.dot(h1.astype(jnp.bfloat16), w2b,
                           preferred_element_type=jnp.float32)
                   + params["b2"]).astype(ep))
    ref_matched = jnp.tanh(h2.astype(jnp.float32) @ params["w3"] + params["b3"])
    tol = 2e-3 if ep == jnp.float32 else 2.5e-2   # EUP bf16 tanh differs by ~ulps
    assert jnp.allclose(out, ref_matched, atol=tol, rtol=tol)

    # (b) Full-f32 PyTorch-semantics reference (bf16 matmuls/epilogue => loose).
    r = jnp.tanh(x @ params["w1"] + params["b1"])
    r = jnp.tanh(r @ params["w2"] + params["b2"])
    ref_f32 = jnp.tanh(r @ params["w3"] + params["b3"])
    assert jnp.allclose(out, ref_f32, atol=6e-2, rtol=6e-2)

    print("KERNEL_OK")
</pallas_src>

<mosaic_0001>
module attributes {stable_mosaic.version = 11 : i64} {
  func.func @kernel(%arg0: i32, %arg1: memref<104x16xf32, #tpu.memory_space<vmem>>, %arg2: memref<16x128xbf16, #tpu.memory_space<vmem>>, %arg3: memref<1x128xf32, #tpu.memory_space<vmem>>, %arg4: memref<128x128xbf16, #tpu.memory_space<vmem>>, %arg5: memref<1x128xf32, #tpu.memory_space<vmem>>, %arg6: memref<1x128xf32, #tpu.memory_space<vmem>>, %arg7: memref<1x1xf32, #tpu.memory_space<vmem>>, %arg8: memref<104x1xf32, #tpu.memory_space<vmem>>) attributes {dimension_semantics = [#tpu.dimension_semantics<parallel>], iteration_bounds = array<i64: 2>, scalar_prefetch = 0 : i64, scratch_operands = 0 : i64, tpu.core_type = #tpu.core_type<tc>, window_params = [{transform_indices = @transform_0, window_bounds = array<i64: 104, 16>}, {pipeline_mode = #tpu.pipeline_mode<synchronous>, transform_indices = @transform_1, window_bounds = array<i64: 16, 128>}, {pipeline_mode = #tpu.pipeline_mode<synchronous>, transform_indices = @transform_2, window_bounds = array<i64: 1, 128>}, {pipeline_mode = #tpu.pipeline_mode<synchronous>, transform_indices = @transform_3, window_bounds = array<i64: 128, 128>}, {pipeline_mode = #tpu.pipeline_mode<synchronous>, transform_indices = @transform_4, window_bounds = array<i64: 1, 128>}, {pipeline_mode = #tpu.pipeline_mode<synchronous>, transform_indices = @transform_5, window_bounds = array<i64: 1, 128>}, {pipeline_mode = #tpu.pipeline_mode<synchronous>, transform_indices = @transform_6, window_bounds = array<i64: 1, 1>}, {transform_indices = @transform_7, window_bounds = array<i64: 104, 1>}]} {
    %c0 = arith.constant 0 : index
    %c0_0 = arith.constant 0 : index
    %0 = vector.load %arg1[%c0, %c0_0] : memref<104x16xf32, #tpu.memory_space<vmem>>, vector<104x16xf32>
    %1 = arith.truncf %0 : vector<104x16xf32> to vector<104x16xbf16>
    %c0_1 = arith.constant 0 : index
    %c0_2 = arith.constant 0 : index
    %2 = vector.load %arg2[%c0_1, %c0_2] : memref<16x128xbf16, #tpu.memory_space<vmem>>, vector<16x128xbf16>
    %cst = arith.constant dense<0.000000e+00> : vector<104x128xf32>
    %3 = tpu.matmul %1, %2, %cst {dimension_numbers = #tpu.dot_dimension_numbers<[1], [0], [0], [1], [0, 0, 1, 1], [], []>} : vector<104x16xbf16>, vector<16x128xbf16>, vector<104x128xf32> -> vector<104x128xf32>
    %c0_3 = arith.constant 0 : index
    %c0_4 = arith.constant 0 : index
    %4 = vector.load %arg3[%c0_3, %c0_4] : memref<1x128xf32, #tpu.memory_space<vmem>>, vector<1x128xf32>
    %5 = vector.broadcast %4 : vector<1x128xf32> to vector<104x128xf32>
    %6 = arith.addf %3, %5 : vector<104x128xf32>
    %7 = math.tanh %6 : vector<104x128xf32>
    %8 = arith.truncf %7 : vector<104x128xf32> to vector<104x128xbf16>
    %c0_5 = arith.constant 0 : index
    %c0_6 = arith.constant 0 : index
    %9 = vector.load %arg4[%c0_5, %c0_6] : memref<128x128xbf16, #tpu.memory_space<vmem>>, vector<128x128xbf16>
    %cst_7 = arith.constant dense<0.000000e+00> : vector<104x128xf32>
    %10 = tpu.matmul %8, %9, %cst_7 {dimension_numbers = #tpu.dot_dimension_numbers<[1], [0], [0], [1], [0, 0, 1, 1], [], []>} : vector<104x128xbf16>, vector<128x128xbf16>, vector<104x128xf32> -> vector<104x128xf32>
    %c0_8 = arith.constant 0 : index
    %c0_9 = arith.constant 0 : index
    %11 = vector.load %arg5[%c0_8, %c0_9] : memref<1x128xf32, #tpu.memory_space<vmem>>, vector<1x128xf32>
    %12 = vector.broadcast %11 : vector<1x128xf32> to vector<104x128xf32>
    %13 = arith.addf %10, %12 : vector<104x128xf32>
    %14 = math.tanh %13 : vector<104x128xf32>
    %c0_10 = arith.constant 0 : index
    %c0_11 = arith.constant 0 : index
    %15 = vector.load %arg6[%c0_10, %c0_11] : memref<1x128xf32, #tpu.memory_space<vmem>>, vector<1x128xf32>
    %16 = vector.broadcast %15 : vector<1x128xf32> to vector<104x128xf32>
    %17 = arith.mulf %14, %16 : vector<104x128xf32>
    %cst_12 = arith.constant dense<0.000000e+00> : vector<104xf32>
    %18 = vector.multi_reduction <add>, %17, %cst_12 [1] : vector<104x128xf32> to vector<104xf32>
    %19 = vector.shape_cast %18 : vector<104xf32> to vector<104x1xf32>
    %c0_13 = arith.constant 0 : index
    %c0_14 = arith.constant 0 : index
    %20 = vector.load %arg7[%c0_13, %c0_14] : memref<1x1xf32, #tpu.memory_space<vmem>>, vector<1x1xf32>
    %21 = vector.broadcast %20 : vector<1x1xf32> to vector<104x1xf32>
    %22 = arith.addf %19, %21 : vector<104x1xf32>
    %23 = math.tanh %22 : vector<104x1xf32>
    %c0_15 = arith.constant 0 : index
    %c0_16 = arith.constant 0 : index
    %24 = vector.load %arg8[%c0_15, %c0_16] : memref<104x1xf32, #tpu.memory_space<vmem>>, vector<104x1xf32>
    tpu.vector_store %arg8[%c0_15, %c0_16], %23 {strides = array<i32>} : memref<104x1xf32, #tpu.memory_space<vmem>>, vector<104x1xf32>,
    return
  }
  func.func @transform_0(%arg0: i32) -> (i32, i32) {
    %c0_i32 = arith.constant 0 : i32
    %c0_i32_0 = arith.constant 0 : i32
    return %arg0, %c0_i32 : i32, i32
  }
  func.func @transform_1(%arg0: i32) -> (i32, i32) {
    %c0_i32 = arith.constant 0 : i32
    %c0_i32_0 = arith.constant 0 : i32
    %c0_i32_1 = arith.constant 0 : i32
    return %c0_i32, %c0_i32_0 : i32, i32
  }
  func.func @transform_2(%arg0: i32) -> (i32, i32) {
    %c0_i32 = arith.constant 0 : i32
    %c0_i32_0 = arith.constant 0 : i32
    %c0_i32_1 = arith.constant 0 : i32
    return %c0_i32, %c0_i32_0 : i32, i32
  }
  func.func @transform_3(%arg0: i32) -> (i32, i32) {
    %c0_i32 = arith.constant 0 : i32
    %c0_i32_0 = arith.constant 0 : i32
    %c0_i32_1 = arith.constant 0 : i32
    return %c0_i32, %c0_i32_0 : i32, i32
  }
  func.func @transform_4(%arg0: i32) -> (i32, i32) {
    %c0_i32 = arith.constant 0 : i32
    %c0_i32_0 = arith.constant 0 : i32
    %c0_i32_1 = arith.constant 0 : i32
    return %c0_i32, %c0_i32_0 : i32, i32
  }
  func.func @transform_5(%arg0: i32) -> (i32, i32) {
    %c0_i32 = arith.constant 0 : i32
    %c0_i32_0 = arith.constant 0 : i32
    %c0_i32_1 = arith.constant 0 : i32
    return %c0_i32, %c0_i32_0 : i32, i32
  }
  func.func @transform_6(%arg0: i32) -> (i32, i32) {
    %c0_i32 = arith.constant 0 : i32
    %c0_i32_0 = arith.constant 0 : i32
    %c0_i32_1 = arith.constant 0 : i32
    return %c0_i32, %c0_i32_0 : i32, i32
  }
  func.func @transform_7(%arg0: i32) -> (i32, i32) {
    %c0_i32 = arith.constant 0 : i32
    %c0_i32_0 = arith.constant 0 : i32
    return %arg0, %c0_i32 : i32, i32
  }
}

</mosaic_0001>

<bundles_post_ra>
// kernel: tpu_custom_call.1
= control target key start
LH: loop header
LB: loop body
LE: loop exit
PB: predicated region body
PF: predicated region fallthrough
CT: control target
= control target key end

     0   :  { %s1555_s0 = inlined_call_operand.vmem [shape: f32[200,16], index: 0, kind: input, shape index: {}]   ;;  %s1556_s1 = inlined_call_operand.vmem [shape: bf16[16,128], index: 1, kind: input, shape index: {}]   ;;  %s1557_s2 = inlined_call_operand.vmem [shape: f32[1,128], index: 2, kind: input, shape index: {}]   ;;  %s1558_s3 = inlined_call_operand.vmem [shape: bf16[128,128], index: 3, kind: input, shape index: {}]   ;;  %s1559_s4 = inlined_call_operand.vmem [shape: f32[1,128], index: 4, kind: input, shape index: {}]   ;;  %s1560_s5 = inlined_call_operand.vmem [shape: f32[1,128], index: 5, kind: input, shape index: {}]   ;;  %s1561_s6 = inlined_call_operand.<no memory space> [shape: f32[1,1], index: 6, kind: input, shape index: {}]   ;;  %s1562_s7 = inlined_call_operand.vmem [shape: f32[200,1], index: 7, kind: output, shape index: {}]  }
   0x1   :  { %v12_v0 = vstv %s1561_s6 }
   0x2   :  { %13 = vst [vmem:[#allocation2] sm:$0x1] %v12_v0 }
   0x3   :  { %s1293_s26 = smov 0   ;;  %s1295_s27 = smov 0  }
   0x4   :  { %s1297_s28 = smov 0  }
   0x5 LB: > { %s1306_s6 = sadd.s32 4294967295, %s1216_s28   ;;  %s1308_s29 = sadd.s32 1, %s1216_s28   ;;  %s1216_s28 = sphi %s1297_s28, %s1571_s28   ;;  %s1212_s27 = sphi %s1295_s27, %s1570_s27   ;;  %s1208_s26 = sphi %s1293_s26, %s1569_s26  }
   0x6   : > { %s175_s30 = ssub.s32 %s1216_s28, %s1308_s29  ;;  %s178_s8 = sadd.s32 1, %s1212_s27 }
   0x7   : > { %p176_p0 = scmp.eq.s32.totalorder %s175_s30, 0  ;;  %p188_p1 = scmp.ne.s32.totalorder %s1212_s27, %s1208_s26 }
   0x8   : > { %p189_p2 = scmp.eq.s32.totalorder %s1306_s6, 1  ;;  %p900_p3 = scmp.ge.s32.totalorder %s1216_s28, 1 }
   0x9   : > { %s1316_s9 = scalar_select %p176_p0, %s1212_s27, %s178_s8  }
   0xa   : > { %p1318_p4 = por %p189_p2, %p188_p1  ;;  %p248_p5 = scmp.lt.s32.totalorder %s1216_s28, 3 }
   0xc   : > { %p249_p6 = pnand %p900_p3, %p248_p5 }
   0xd   : > { %s1326_s13 = smul.u32 (!%p249_p6), 13, %s1306_s6  ;;  %s280_s24 = sand.u32 (!%p249_p6), 1, %s1208_s26  }
   0xe   : > { %252 = sbr.rel (%p249_p6) target bundleno = 588 (0x24c), region = 48 }
   0xf   : > { %p288_p7 = scmp.lt.s32.totalorder (!%p249_p6), %s1326_s13, 24  ;;  %s984_s25 = smul.u32 (!%p249_p6), 104, %s280_s24 }
  0x11   : > { %s1423_s28 = scalar_lea.vmem (!%p249_p6), [#allocation3], %s984_s25  }
  0x13   : > { %v957_v1 = vld [vmem:[%s1556_s1] sm:$0xff]  ;;  %s289_s14 = scalar_select %p288_p7, %s1326_s13, 24  ;;  %vm335_vm0 = vcmask 130048   ;;  %v965_v14 = vld [vmem:[%s1558_s3 + $0x38] sm:$0xff]  ;;  %v964_v15 = vld [vmem:[%s1558_s3 + $0x30] sm:$0xff]  ;;  %vm617_vm1 = vcmask 7168  }
  0x14   : > { %364 = vmatpush.bf16.msra.mxu0 %v957_v1  ;;  %967 = vmatpush.bf16.msra.mxu3 %v957_v1  ;;  %v963_v16 = vld [vmem:[%s1558_s3 + $0x28] sm:$0xff]  ;;  %v962_v25 = vld [vmem:[%s1558_s3 + $0x20] sm:$0xff]  ;;  %v961_v26 = vld [vmem:[%s1558_s3 + $0x18] sm:$0xff]  ;;  %s639_s26 = ssub.s32 (%p1318_p4), 25, %s1326_s13  ;;  %s966_s30 = smul.u32 (%p1318_p4), 104, %s1306_s6 }
  0x15   : > { %s901_s15 = sshll.u32 %s289_s14, 3  ;;  %488 = vmatpush.bf16.msra.mxu1 %v965_v14  ;;  %968 = vmatpush.bf16.msra.mxu2 %v965_v14  ;;  %v960_v27 = vld [vmem:[%s1558_s3 + $0x10] sm:$0xff]  ;;  %v959_v28 = vld [vmem:[%s1558_s3 + $0x8] sm:$0xff]  ;;  %v958_v29 = vld [vmem:[%s1558_s3] sm:$0xff]  ;;  %p640_p8 = scmp.lt.s32.totalorder (%p1318_p4), %s639_s26, 13 }
  0x16   : > { %s1333_s18 = scalar_lea.vmem %s1555_s0, %s901_s15  ;;  %v1074_v31 = vld [vmem:[%s1557_s2] ss:$0 sm:$0xff]  ;;  %s1469_s12 = scalar_lea.vmem (%p1318_p4), %s1562_s7, %s966_s30  }
  0x17   : > { %v303_v2 = vld [vmem:[%s1333_s18] sm:$0xff]  ;;  %v304_v3 = vld [vmem:[%s1333_s18 + $0x8] sm:$0xff]  ;;  %v305_v5 = vld [vmem:[%s1333_s18 + $0x10] sm:$0xff] }
  0x18   : > { %v316_v4 = vpack.c.bf16 %v304_v3, %v303_v2  ;;  %v306_v6 = vld [vmem:[%s1333_s18 + $0x18] sm:$0xff]  ;;  %v307_v8 = vld [vmem:[%s1333_s18 + $0x20] sm:$0xff]  ;;  %v308_v9 = vld [vmem:[%s1333_s18 + $0x28] sm:$0xff]  ;;  %969 = vmatpush.bf16.msrb.mxu3 %v965_v14 }
  0x19   : > { %v317_v7 = vpack.c.bf16 %v306_v6, %v305_v5  ;;  %v318_v10 = vpack.c.bf16 %v308_v9, %v307_v8  ;;  %v313_v11 = vld [vmem:[%s1333_s18 + $0x50] sm:$0xff]  ;;  %v314_v12 = vld [vmem:[%s1333_s18 + $0x58] sm:$0xff]  ;;  %489 = vmatpush.bf16.msra.mxu1 %v964_v15  ;;  %970 = vmatpush.bf16.msra.mxu2 %v964_v15  ;;  %v315_v19 = vld [vmem:[%s1333_s18 + $0x60] sm:$0xff] }
  0x1a   : > { %906 = vmatmul.msk.bf16.vlgmr.msra.gmra.mxu0 %vm335_vm0, %v316_v4  ;;  %v321_v13 = vpack.c.bf16 %v314_v12, %v313_v11  ;;  %v309_v17 = vld [vmem:[%s1333_s18 + $0x30] sm:$0xff]  ;;  %v310_v18 = vld [vmem:[%s1333_s18 + $0x38] sm:$0xff]  ;;  %v322_v21 = vpack.c.bf16 %v315_v19, %v315_v19  ;;  %v311_v22 = vld [vmem:[%s1333_s18 + $0x40] sm:$0xff] }
  0x1b   : > { %v319_v20 = vpack.c.bf16 %v310_v18, %v309_v17  ;;  %v312_v23 = vld [vmem:[%s1333_s18 + $0x48] sm:$0xff]  ;;  %v1385_v14 = vld [vmem:[%s1559_s4] ss:$0 sm:$0xff] }
  0x1c   : > { %911 = vmatmul.msk.bf16.vlgmr.msra.gmra.mxu3 %vm335_vm0, %v321_v13  ;;  %v320_v24 = vpack.c.bf16 %v312_v23, %v311_v22  ;;  %v1391_v17 = vld [vmem:[%s1560_s5] ss:$0 sm:$0xff] }
  0x1d   : > { %971 = vmatpush.bf16.msrb.mxu3 %v964_v15  ;;  %490 = vmatpush.bf16.msra.mxu1 %v963_v16 }
  0x1e   : > { %972 = vmatpush.bf16.msra.mxu2 %v963_v16 }
  0x21   : > { %973 = vmatpush.bf16.msrb.mxu3 %v963_v16  ;;  %491 = vmatpush.bf16.msra.mxu1 %v962_v25 }
  0x22   : > { %974 = vmatpush.bf16.msra.mxu2 %v962_v25 }
  0x25   : > { %975 = vmatpush.bf16.msrb.mxu3 %v962_v25  ;;  %492 = vmatpush.bf16.msra.mxu1 %v961_v26 }
  0x26   : > { %976 = vmatpush.bf16.msra.mxu2 %v961_v26 }
  0x29   : > { %977 = vmatpush.bf16.msrb.mxu3 %v961_v26  ;;  %493 = vmatpush.bf16.msra.mxu1 %v960_v27 }
  0x2a   : > { %907 = vmatmul.msk.bf16.gmra.mxu0 %vm335_vm0, %v317_v7  ;;  %978 = vmatpush.bf16.msra.mxu2 %v960_v27 }
  0x2c   : > { %912 = vmatmul.msk.bf16.gmra.mxu3 %vm335_vm0, %v322_v21 }
  0x2d   : > { %979 = vmatpush.bf16.msrb.mxu3 %v960_v27  ;;  %494 = vmatpush.bf16.msra.mxu1 %v959_v28 }
  0x2e   : > { %980 = vmatpush.bf16.msra.mxu2 %v959_v28 }
  0x31   : > { %981 = vmatpush.bf16.msrb.mxu3 %v959_v28  ;;  %495 = vmatpush.bf16.msra.mxu1 %v958_v29 }
  0x32   : > { %982 = vmatpush.bf16.msra.mxu2 %v958_v29 }
  0x35   : > { %983 = vmatpush.bf16.msrb.mxu3 %v958_v29 }
  0x3a   : > { %908 = vmatmul.msk.bf16.gmra.mxu0 %vm335_vm0, %v318_v10 }
  0x4a   : > { %909 = vmatmul.msk.bf16.gmra.mxu0 %vm335_vm0, %v319_v20 }
  0x5a   : > { %910 = vmatmul.msk.bf16.gmra.mxu0 %vm335_vm0, %v320_v24 }
  0x97   : > { %v366_v30 = vpop.f32.mrf.mxu0 }
  0x98   : > { %v367_v32 = vadd.f32 %v1074_v31, %v366_v30 }
  0x9a   : > { %1078 = vtanh.f32 %v367_v32 }
  0x9f   : > { %v368_v33 = vpop.f32.mrf.mxu0  ;;  %v391_v48 = vpop.f32.mrf.mxu3 }
  0xa0   : > { %v369_v34 = vadd.f32 %v1074_v31, %v368_v33  ;;  %v1079_v35 = vpop.eup %1078  ;;  %v392_v9 = vadd.f32 %v1074_v31, %v391_v48 }
  0xa2   : > { %1080 = vtanh.f32 %v369_v34 }
  0xa7   : > { %v371_v36 = vpop.f32.mrf.mxu0  ;;  %v393_v52 = vpop.f32.mrf.mxu3 }
  0xa8   : > { %v1081_v37 = vpop.eup %1080  ;;  %v372_v39 = vadd.f32 %v1074_v31, %v371_v36  ;;  %v394_v10 = vadd.f32 %v1074_v31, %v393_v52 }
  0xa9   : > { %v413_v38 = vpack.c.bf16 %v1081_v37, %v1079_v35 }
  0xaa   : > { %1082 = vtanh.f32 %v372_v39 }
  0xab   : > { %496 = vmatmul.bf16.vlgmr.msra.gmra.mxu1 %v413_v38 }
  0xaf   : > { %v373_v40 = vpop.f32.mrf.mxu0  ;;  %v396_v57 = vpop.f32.mrf.mxu3 }
  0xb0   : > { %v374_v41 = vadd.f32 %v1074_v31, %v373_v40  ;;  %v1083_v42 = vpop.eup %1082  ;;  %v397_v59 = vadd.f32 %v1074_v31, %v396_v57 }
  0xb2   : > { %1084 = vtanh.f32 %v374_v41 }
  0xb7   : > { %v376_v43 = vpop.f32.mrf.mxu0  ;;  %v398_v62 = vpop.f32.mrf.mxu3 }
  0xb8   : > { %v1085_v44 = vpop.eup %1084  ;;  %v377_v46 = vadd.f32 %v1074_v31, %v376_v43 }
  0xb9   : > { %v414_v45 = vpack.c.bf16 %v1085_v44, %v1083_v42 }
  0xba   : > { %1086 = vtanh.f32 %v377_v46 }
  0xbb   : > { %501 = vmatmul.bf16.gmra.mxu1 %v414_v45 }
  0xbf   : > { %v378_v47 = vpop.f32.mrf.mxu0 }
  0xc0   : > { %v379_v49 = vadd.f32 %v1074_v31, %v378_v47  ;;  %v1087_v50 = vpop.eup %1086 }
  0xc2   : > { %1088 = vtanh.f32 %v379_v49 }
  0xc7   : > { %v381_v51 = vpop.f32.mrf.mxu0 }
  0xc8   : > { %v1089_v53 = vpop.eup %1088  ;;  %v382_v55 = vadd.f32 %v1074_v31, %v381_v51 }
  0xc9   : > { %v415_v54 = vpack.c.bf16 %v1089_v53, %v1087_v50 }
  0xca   : > { %1090 = vtanh.f32 %v382_v55 }
  0xcb   : > { %506 = vmatmul.bf16.gmra.mxu1 %v415_v54 }
  0xcf   : > { %v383_v56 = vpop.f32.mrf.mxu0 }
  0xd0   : > { %v384_v58 = vadd.f32 %v1074_v31, %v383_v56  ;;  %v1091_v60 = vpop.eup %1090 }
  0xd2   : > { %1092 = vtanh.f32 %v384_v58 }
  0xd3   : > { %1094 = vtanh.f32 %v397_v59 }
  0xd7   : > { %v386_v61 = vpop.f32.mrf.mxu0 }
  0xd8   : > { %v1093_v63 = vpop.eup %1092  ;;  %v387_v3 = vadd.f32 %v1074_v31, %v386_v61 }
  0xd9   : > { %v1095_v0 = vpop.eup %1094  ;;  %v416_v1 = vpack.c.bf16 %v1093_v63, %v1091_v60 }
  0xda   : > { %v419_v2 = vpack.c.bf16 %v1095_v0, %v1095_v0  ;;  %1096 = vtanh.f32 %v387_v3 }
  0xdb   : > { %511 = vmatmul.bf16.vlgmr.msra.gmra.mxu2 %v416_v1 }
  0xdc   : > { %526 = vmatmul.bf16.vlgmr.msrb.gmra.mxu3 %v419_v2 }
  0xdf   : > { %v388_v4 = vpop.f32.mrf.mxu0 }
  0xe0   : > { %v389_v5 = vadd.f32 %v1074_v31, %v388_v4  ;;  %v1097_v6 = vpop.eup %1096 }
  0xe2   : > { %1098 = vtanh.f32 %v389_v5  ;;  %v1418_v5 = vld [vmem:[#allocation2] ss:$0 sm:$0xff] }
  0xe3   : > { %1100 = vtanh.f32 %v392_v9 }
  0xe4   : > { %1102 = vtanh.f32 %v394_v10 }
  0xe8   : > { %v1099_v7 = vpop.eup %1098 }
  0xe9   : > { %v417_v8 = vpack.c.bf16 %v1099_v7, %v1097_v6  ;;  %v1101_v11 = vpop.eup %1100 }
  0xea   : > { %v1103_v12 = vpop.eup %1102 }
  0xeb   : > { %516 = vmatmul.bf16.gmra.mxu2 %v417_v8  ;;  %v418_v13 = vpack.c.bf16 %v1103_v12, %v1101_v11 }
  0xfb   : > { %521 = vmatmul.bf16.gmra.mxu2 %v418_v13 }
 0x128   : > { %v497_v15 = vpop.f32.mrf.mxu1 }
 0x129   : > { %v498_v16 = vadd.f32 %v1385_v14, %v497_v15 }
 0x12b   : > { %1104 = vtanh.f32 %v498_v16 }
 0x130   : > { %v499_v18 = vpop.f32.mrf.mxu1 }
 0x131   : > { %v1105_v19 = vpop.eup %1104  ;;  %v500_v20 = vadd.f32 %v1385_v14, %v499_v18 }
 0x132   : > { %v548_v21 = vmul.f32 %v1105_v19, %v1391_v17 }
 0x133   : > { %1106 = vtanh.f32 %v500_v20 }
 0x134   : > { %561 = vadd.xlane.f32.xlu0 %v548_v21 }
 0x138   : > { %v502_v22 = vpop.f32.mrf.mxu1 }
 0x139   : > { %v1107_v23 = vpop.eup %1106  ;;  %v503_v24 = vadd.f32 %v1385_v14, %v502_v22 }
 0x13a   : > { %v549_v25 = vmul.f32 %v1107_v23, %v1391_v17 }
 0x13b   : > { %1108 = vtanh.f32 %v503_v24 }
 0x13c   : > { %563 = vadd.xlane.f32.xlu0 %v549_v25 }
 0x140   : > { %v504_v26 = vpop.f32.mrf.mxu1 }
 0x141   : > { %v1109_v27 = vpop.eup %1108  ;;  %v505_v28 = vadd.f32 %v1385_v14, %v504_v26 }
 0x142   : > { %v550_v29 = vmul.f32 %v1109_v27, %v1391_v17 }
 0x143   : > { %1110 = vtanh.f32 %v505_v28 }
 0x144   : > { %565 = vadd.xlane.f32.xlu1 %v550_v29 }
 0x148   : > { %v507_v30 = vpop.f32.mrf.mxu1 }
 0x149   : > { %v1111_v31 = vpop.eup %1110  ;;  %v508_v32 = vadd.f32 %v1385_v14, %v507_v30 }
 0x14a   : > { %v551_v33 = vmul.f32 %v1111_v31, %v1391_v17 }
 0x14b   : > { %1112 = vtanh.f32 %v508_v32 }
 0x14c   : > { %567 = vadd.xlane.f32.xlu1 %v551_v33 }
 0x150   : > { %v509_v34 = vpop.f32.mrf.mxu1 }
 0x151   : > { %v1113_v35 = vpop.eup %1112  ;;  %v510_v36 = vadd.f32 %v1385_v14, %v509_v34 }
 0x152   : > { %v552_v37 = vmul.f32 %v1113_v35, %v1391_v17 }
 0x153   : > { %1114 = vtanh.f32 %v510_v36 }
 0x154   : > { %569 = vadd.xlane.f32.xlu2 %v552_v37 }
 0x159   : > { %v1115_v38 = vpop.eup %1114 }
 0x15a   : > { %v553_v39 = vmul.f32 %v1115_v38, %v1391_v17 }
 0x15c   : > { %571 = vadd.xlane.f32.xlu2 %v553_v39 }
 0x15e   : > { %v512_v40 = vpop.f32.mrf.mxu2 }
 0x15f   : > { %v513_v41 = vadd.f32 %v1385_v14, %v512_v40  ;;  %v527_v42 = vpop.f32.mrf.mxu3 }
 0x160   : > { %v528_v56 = vadd.f32 %v1385_v14, %v527_v42 }
 0x161   : > { %1116 = vtanh.f32 %v513_v41 }
 0x166   : > { %v514_v43 = vpop.f32.mrf.mxu2 }
 0x167   : > { %v1117_v44 = vpop.eup %1116  ;;  %v515_v45 = vadd.f32 %v1385_v14, %v514_v43  ;;  %v529_v46 = vpop.f32.mrf.mxu3 }
 0x168   : > { %v554_v47 = vmul.f32 %v1117_v44, %v1391_v17 }
 0x169   : > { %1118 = vtanh.f32 %v515_v45 }
 0x16a   : > { %573 = vadd.xlane.f32.xlu0 %v554_v47 }
 0x16e   : > { %v517_v48 = vpop.f32.mrf.mxu2 }
 0x16f   : > { %v1119_v49 = vpop.eup %1118  ;;  %v518_v50 = vadd.f32 %v1385_v14, %v517_v48 }
 0x170   : > { %v555_v51 = vmul.f32 %v1119_v49, %v1391_v17 }
 0x171   : > { %1120 = vtanh.f32 %v518_v50 }
 0x172   : > { %575 = vadd.xlane.f32.xlu1 %v555_v51 }
 0x176   : > { %v519_v52 = vpop.f32.mrf.mxu2 }
 0x177   : > { %v1121_v53 = vpop.eup %1120  ;;  %v520_v54 = vadd.f32 %v1385_v14, %v519_v52 }
 0x178   : > { %v556_v55 = vmul.f32 %v1121_v53, %v1391_v17 }
 0x179   : > { %1122 = vtanh.f32 %v520_v54 }
 0x17a   : > { %577 = vadd.xlane.f32.xlu2 %v556_v55  ;;  %1124 = vtanh.f32 %v528_v56 }
 0x17e   : > { %v522_v57 = vpop.f32.mrf.mxu2 }
 0x17f   : > { %v1123_v58 = vpop.eup %1122  ;;  %v523_v59 = vadd.f32 %v1385_v14, %v522_v57 }
 0x180   : > { %v557_v60 = vmul.f32 %v1123_v58, %v1391_v17  ;;  %v1125_v61 = vpop.eup %1124 }
 0x181   : > { %1126 = vtanh.f32 %v523_v59  ;;  %v560_v63 = vmul.f32 %v1125_v61, %v1391_v17 }
 0x182   : > { %579 = vadd.xlane.f32.xlu0 %v557_v60 }
 0x186   : > { %v524_v62 = vpop.f32.mrf.mxu2 }
 0x187   : > { %v1127_v0 = vpop.eup %1126  ;;  %v525_v1 = vadd.f32 %v1385_v14, %v524_v62 }
 0x188   : > { %v558_v2 = vmul.f32 %v1127_v0, %v1391_v17 }
 0x189   : > { %1128 = vtanh.f32 %v525_v1 }
 0x18a   : > { %581 = vadd.xlane.f32.xlu1 %v558_v2  ;;  %585 = vadd.xlane.f32.xlu0 %v560_v63 }
 0x18f   : > { %v1129_v3 = vpop.eup %1128 }
 0x190   : > { %v559_v4 = vmul.f32 %v1129_v3, %v1391_v17 }
 0x192   : > { %583 = vadd.xlane.f32.xlu2 %v559_v4 }
 0x1a7   : > { %v562_v6 = vpop.xlane.xlu0 %561 }
 0x1a8   : > { %v591_v7 = vadd.f32 %v1418_v5, %v562_v6 }
 0x1aa   : > { %1130 = vtanh.f32 %v591_v7 }
 0x1af   : > { %v564_v8 = vpop.xlane.xlu0 %563 }
 0x1b0   : > { %v1131_v9 = vpop.eup %1130  ;;  %v592_v10 = vadd.f32 %v1418_v5, %v564_v8 }
 0x1b1   : > { %618 = vst.msk [vmem:[%s1423_s28] sm:$0xff] %vm617_vm1, %v1131_v9 }
 0x1b2   : > { %1132 = vtanh.f32 %v592_v10 }
 0x1b7   : > { %v566_v11 = vpop.xlane.xlu1 %565 }
 0x1b8   : > { %v1133_v12 = vpop.eup %1132  ;;  %v593_v13 = vadd.f32 %v1418_v5, %v566_v11 }
 0x1b9   : > { %619 = vst.msk [vmem:[%s1423_s28 + $0x8] sm:$0xff] %vm617_vm1, %v1133_v12 }
 0x1ba   : > { %1134 = vtanh.f32 %v593_v13 }
 0x1bf   : > { %v568_v14 = vpop.xlane.xlu1 %567 }
 0x1c0   : > { %v1135_v15 = vpop.eup %1134  ;;  %v594_v16 = vadd.f32 %v1418_v5, %v568_v14 }
 0x1c1   : > { %620 = vst.msk [vmem:[%s1423_s28 + $0x10] sm:$0xff] %vm617_vm1, %v1135_v15 }
 0x1c2   : > { %1136 = vtanh.f32 %v594_v16 }
 0x1c7   : > { %v570_v17 = vpop.xlane.xlu2 %569 }
 0x1c8   : > { %v1137_v18 = vpop.eup %1136  ;;  %v595_v19 = vadd.f32 %v1418_v5, %v570_v17 }
 0x1c9   : > { %621 = vst.msk [vmem:[%s1423_s28 + $0x18] sm:$0xff] %vm617_vm1, %v1137_v18 }
 0x1ca   : > { %1138 = vtanh.f32 %v595_v19 }
 0x1cf   : > { %v572_v20 = vpop.xlane.xlu2 %571 }
 0x1d0   : > { %v1139_v21 = vpop.eup %1138  ;;  %v596_v22 = vadd.f32 %v1418_v5, %v572_v20 }
 0x1d1   : > { %622 = vst.msk [vmem:[%s1423_s28 + $0x20] sm:$0xff] %vm617_vm1, %v1139_v21 }
 0x1d2   : > { %1140 = vtanh.f32 %v596_v22 }
 0x1d8   : > { %v1141_v23 = vpop.eup %1140 }
 0x1d9   : > { %623 = vst.msk [vmem:[%s1423_s28 + $0x28] sm:$0xff] %vm617_vm1, %v1141_v23 }
 0x1dd   : > { %v574_v24 = vpop.xlane.xlu0 %573 }
 0x1de   : > { %v597_v25 = vadd.f32 %v1418_v5, %v574_v24 }
 0x1e0   : > { %1142 = vtanh.f32 %v597_v25 }
 0x1e5   : > { %v576_v26 = vpop.xlane.xlu1 %575 }
 0x1e6   : > { %v1143_v27 = vpop.eup %1142  ;;  %v598_v28 = vadd.f32 %v1418_v5, %v576_v26 }
 0x1e7   : > { %624 = vst.msk [vmem:[%s1423_s28 + $0x30] sm:$0xff] %vm617_vm1, %v1143_v27 }
 0x1e8   : > { %1144 = vtanh.f32 %v598_v28 }
 0x1ed   : > { %v578_v29 = vpop.xlane.xlu2 %577 }
 0x1ee   : > { %v1145_v30 = vpop.eup %1144  ;;  %v599_v31 = vadd.f32 %v1418_v5, %v578_v29 }
 0x1ef   : > { %625 = vst.msk [vmem:[%s1423_s28 + $0x38] sm:$0xff] %vm617_vm1, %v1145_v30 }
 0x1f0   : > { %1146 = vtanh.f32 %v599_v31 }
 0x1f5   : > { %v580_v32 = vpop.xlane.xlu0 %579 }
 0x1f6   : > { %v1147_v33 = vpop.eup %1146  ;;  %v600_v34 = vadd.f32 %v1418_v5, %v580_v32 }
 0x1f7   : > { %626 = vst.msk [vmem:[%s1423_s28 + $0x40] sm:$0xff] %vm617_vm1, %v1147_v33 }
 0x1f8   : > { %1148 = vtanh.f32 %v600_v34 }
 0x1fd   : > { %v582_v35 = vpop.xlane.xlu1 %581  ;;  %v586_v36 = vpop.xlane.xlu0 %585 }
 0x1fe   : > { %v1149_v37 = vpop.eup %1148  ;;  %v601_v38 = vadd.f32 %v1418_v5, %v582_v35  ;;  %v603_v39 = vadd.f32 %v1418_v5, %v586_v36 }
 0x1ff   : > { %627 = vst.msk [vmem:[%s1423_s28 + $0x48] sm:$0xff] %vm617_vm1, %v1149_v37 }
 0x200   : > { %1150 = vtanh.f32 %v601_v38 }
 0x201   : > { %1152 = vtanh.f32 %v603_v39 }
 0x205   : > { %v584_v40 = vpop.xlane.xlu2 %583 }
 0x206   : > { %v1151_v41 = vpop.eup %1150  ;;  %v602_v42 = vadd.f32 %v1418_v5, %v584_v40 }
 0x207   : > { %v1153_v43 = vpop.eup %1152  ;;  %628 = vst.msk [vmem:[%s1423_s28 + $0x50] sm:$0xff] %vm617_vm1, %v1151_v41 }
 0x208   : > { %1154 = vtanh.f32 %v602_v42  ;;  %630 = vst.msk [vmem:[%s1423_s28 + $0x60] sm:$0xff] %vm617_vm1, %v1153_v43 }
 0x20b   : > { %637 = sbr.rel (!%p1318_p4) target bundleno = 588 (0x24c), region = 52 }
 0x20e   : > { %v1155_v44 = vpop.eup %1154 }
 0x20f   : > { %629 = vst.msk [vmem:[%s1423_s28 + $0x58] sm:$0xff] %vm617_vm1, %v1155_v44 }
 0x210   : > { %s1573_s26 = smov (!%p640_p8, %s639_s26), 13 }
 0x211   : > { %s945_s14 = sshll.u32 %s1573_s26, 3 }
 0x212   : > { %p948_p9 = scmp.eq.s32.totalorder %s945_s14, 0 }
 0x213   : > { %1156 = sdivrem.u32 (!%p948_p9), %s1573_s26, 13 }
 0x214   : > { %648 = sbr.rel (%p948_p9) target bundleno = 588 (0x24c), region = 56 }
 0x21c   : > { %s1475_s10 = spop.drf %1156 }
 0x21d   : > { %s1158_s15 = spop.drf %1156  ;;  %p949_p10 = scmp.le.s32.totalorder %s1475_s10, 0 }
 0x21e   : > { %s1564_s6 = smov (!%p949_p10), %s1469_s12  ;;  %s1565_s13 = smov (!%p949_p10), %s1423_s28 }
 0x21f   : > { %853 = sbr.rel (%p949_p10) target bundleno = 562 (0x232), region = 132  ;;  %s1484_s16 = smov (!%p949_p10), 0  }
 0x220   : > { %s1486_s17 = smov (!%p949_p10), 0  }
 0x224 LB: >> { %v737_v45 = vld [vmem:[%s1224_s13] sm:$0xff]  ;;  %v739_v46 = vld [vmem:[%s1224_s13 + $0x8] sm:$0xff]  ;;  %v741_v47 = vld [vmem:[%s1224_s13 + $0x10] sm:$0xff]  ;;  %s763_s18 = sadd.s32 1, %s1228_s16  ;;  %s731_s17 = sadd.s32 1, %s1232_s17   ;;  %s1232_s17 = sphi %s1486_s17, %s731_s17   ;;  %s1228_s16 = sphi %s1484_s16, %s1568_s16   ;;  %s1224_s13 = sphi %s1565_s13, %s1567_s13   ;;  %s1220_s6 = sphi %s1564_s6, %s1566_s6  }
 0x225   : >> { %738 = vst [vmem:[%s1220_s6] sm:$0xff] %v737_v45  ;;  %v743_v48 = vld [vmem:[%s1224_s13 + $0x18] sm:$0xff]  ;;  %p764_p11 = scmp.ge.s32.totalorder %s763_s18, %s1475_s10  ;;  %v745_v49 = vld [vmem:[%s1224_s13 + $0x20] sm:$0xff]  ;;  %v747_v50 = vld [vmem:[%s1224_s13 + $0x28] sm:$0xff]  ;;  %p730_p12 = scmp.ge.s32.totalorder %s731_s17, %s1475_s10 }
 0x226   : >> { %740 = vst [vmem:[%s1220_s6 + $0x8] sm:$0xff] %v739_v46  ;;  %v749_v51 = vld [vmem:[%s1224_s13 + $0x30] sm:$0xff]  ;;  %v751_v52 = vld [vmem:[%s1224_s13 + $0x38] sm:$0xff]  ;;  %v753_v53 = vld [vmem:[%s1224_s13 + $0x40] sm:$0xff] }
 0x227   : >> { %742 = vst [vmem:[%s1220_s6 + $0x10] sm:$0xff] %v741_v47  ;;  %s1575_s18 = smov (%p764_p11, %s763_s18), 0  ;;  %v755_v54 = vld [vmem:[%s1224_s13 + $0x48] sm:$0xff]  ;;  %v757_v55 = vld [vmem:[%s1224_s13 + $0x50] sm:$0xff]  ;;  %v759_v56 = vld [vmem:[%s1224_s13 + $0x58] sm:$0xff] }
 0x228   : >> { %744 = vst [vmem:[%s1220_s6 + $0x18] sm:$0xff] %v743_v48  ;;  %s766_s19 = smul.u32 104, %s1575_s18  ;;  %v761_v57 = vld [vmem:[%s1224_s13 + $0x60] sm:$0xff]  ;;  %s1568_s16 = smov %s1575_s18 }
 0x229   : >> { %746 = vst [vmem:[%s1220_s6 + $0x20] sm:$0xff] %v745_v49 }
 0x22a   : >> { %748 = vst [vmem:[%s1220_s6 + $0x28] sm:$0xff] %v747_v50  ;;  %s768_s20 = scalar_lea.vmem %s1423_s28, %s766_s19 [#allocation3]   ;;  %s769_s21 = scalar_lea.vmem %s1469_s12, %s766_s19  }
 0x22b   : >> { %750 = vst [vmem:[%s1220_s6 + $0x30] sm:$0xff] %v749_v51  ;;  %s1567_s13 = smov %s768_s20 }
 0x22c   : >> { %752 = vst [vmem:[%s1220_s6 + $0x38] sm:$0xff] %v751_v52 }
 0x22d   : >> { %754 = vst [vmem:[%s1220_s6 + $0x40] sm:$0xff] %v753_v53  ;;  %733 = sbr.rel (!%p730_p12) target bundleno = 548 (0x224), region = 138 }
 0x22e   : >> { %756 = vst [vmem:[%s1220_s6 + $0x48] sm:$0xff] %v755_v54 }
 0x22f   : >> { %758 = vst [vmem:[%s1220_s6 + $0x50] sm:$0xff] %v757_v55 }
 0x230   : >> { %760 = vst [vmem:[%s1220_s6 + $0x58] sm:$0xff] %v759_v56 }
 0x231   : >> { %762 = vst [vmem:[%s1220_s6 + $0x60] sm:$0xff] %v761_v57  ;;  %s1566_s6 = smov %s769_s21 }
 0x232 PF: > { %1159 = sdivrem.u32 %s1573_s26, 13 }
 0x233   : > { %s950_s22 = smul.u32 104, %s1475_s10 }
 0x235   : > { %s1540_s23 = scalar_lea.vmem %s1423_s28, %s950_s22 [#allocation3]   ;;  %s776_s24 = scalar_lea.vmem %s1469_s12, %s950_s22  }
 0x23b   : > { %s1160_s25 = spop.drf %1159 }
 0x23c   : > { %s1161_s30 = spop.drf %1159 }
 0x23d   : > { %p952_p13 = scmp.le.s32.totalorder %s1161_s30, 0 }
 0x23e   : > { %s1234_s8 = smov (!%p952_p13), %s776_s24   ;;  %s1238_s11 = smov (!%p952_p13), %s1540_s23  }
 0x23f   : > { %867 = sbr.rel (%p952_p13) target bundleno = 588 (0x24c), region = 143  ;;  %s1242_s14 = smov (!%p952_p13), 0  }
 0x240   : > { %s1246_s15 = smov (!%p952_p13), 0  }
 0x244 LB: >> { %v786_v58 = vld [vmem:[%s1240_s11] sm:$0xff]  ;;  %s788_s28 = sadd.s32 1, %s1244_s14  ;;  %s780_s15 = sadd.s32 1, %s1248_s15   ;;  %s1248_s15 = sphi %s1246_s15, %s780_s15   ;;  %s1244_s14 = sphi %s1242_s14, %s1243_s14   ;;  %s1240_s11 = sphi %s1238_s11, %s793_s11   ;;  %s1236_s8 = sphi %s1234_s8, %s794_s8  }
 0x245   : >> { %787 = vst [vmem:[%s1236_s8] sm:$0xff] %v786_v58  ;;  %p789_p0 = scmp.ge.s32.totalorder %s788_s28, %s1161_s30  ;;  %p779_p1 = scmp.ge.s32.totalorder %s780_s15, %s1161_s30 }
 0x247   : >> { %s1577_s28 = smov (%p789_p0, %s788_s28), 0  ;;  %782 = sbr.rel (!%p779_p1) target bundleno = 580 (0x244), region = 149 }
 0x248   : >> { %s953_s26 = sshll.u32 %s1577_s28, 3  ;;  %s1243_s14 = smov %s1577_s28  }
 0x249   : >> { %s793_s11 = scalar_lea.vmem %s1540_s23, %s953_s26 [#allocation3]   ;;  %s794_s8 = scalar_lea.vmem %s776_s24, %s953_s26  }
 0x24c PF: > { %p16_p2 = scmp.ge.s32.totalorder %s1308_s29, 4   ;;  %s1569_s26 = smov %s1212_s27 }
 0x24d   : > { %s1570_s27 = smov %s1316_s9  ;;  %s1571_s28 = smov %s1308_s29 }
 0x24e   :  { %18 = sbr.rel (!%p16_p2) target bundleno = 5 (0x5), region = 160 }

</bundles_post_ra>
